<compile_context>
chip_gen: v7x
topology: tpu7x:2x2x1
jax: 0.10.0
libtpu: 0.0.40
codegen_flags: <defaults>
</compile_context>

<pallas_src>
import math

import numpy as np

import jax
import jax.numpy as jnp
from jax.experimental import pallas as pl
from jax.experimental.pallas import tpu as pltpu


# ---------------------------------------------------------------------------
# Bulk HBM->HBM DMA path
# ---------------------------------------------------------------------------

_MAX_SLABS_PER_INPUT = 8      # keep descriptor count modest on v5e/v6e
_MIN_SLAB_BYTES = 4 << 20     # only chunk inputs >= 8 MiB (>= ~4 MiB per slab)


def _plan_slabs(shape, itemsize):
    """Split one input into a few slabs along axis 0 (multiple in-flight DMAs)."""
    n0 = int(shape[0])
    total_bytes = itemsize
    for d in shape:
        total_bytes *= int(d)
    if n0 <= 1 or total_bytes < 2 * _MIN_SLAB_BYTES:
        return [(0, n0)]
    k = min(_MAX_SLABS_PER_INPUT, n0, max(1, total_bytes // _MIN_SLAB_BYTES))
    base, rem = divmod(n0, k)
    slabs, start = [], 0
    for j in range(k):
        length = base + (1 if j < rem else 0)
        slabs.append((start, length))
        start += length
    return slabs


def _make_dma_concat_kernel(plans, ndim, dim, num_inputs):
    """plans[i] = (dst_offset, dst_size, [(slab_start, slab_len), ...])."""

    def kernel(*refs):
        in_refs = refs[:num_inputs]
        out_ref = refs[num_inputs]
        sem = refs[num_inputs + 1]

        copies = []
        k = 0
        for r, (off, sz, slabs) in zip(in_refs, plans):
            for (start, length) in slabs:
                src_idx = [slice(None)] * ndim
                dst_idx = [slice(None)] * ndim
                src_idx[0] = pl.ds(start, length)
                if dim == 0:
                    dst_idx[0] = pl.ds(off + start, length)
                else:
                    dst_idx[0] = pl.ds(start, length)
                    dst_idx[dim] = pl.ds(off, sz)
                cp = pltpu.make_async_copy(
                    r.at[tuple(src_idx)], out_ref.at[tuple(dst_idx)], sem.at[k])
                cp.start()
                copies.append(cp)
                k += 1
        # All DMAs are now in flight and overlap; wait for completion.
        for cp in copies:
            cp.wait()

    return kernel


def _concat_dma(xs, dim, offsets, sizes, out_shape, dtype):
    ndim = len(out_shape)
    itemsize = np.dtype(dtype).itemsize
    plans, total_dmas = [], 0
    for x, off, sz in zip(xs, offsets, sizes):
        slabs = _plan_slabs(x.shape, itemsize)
        plans.append((off, sz, slabs))
        total_dmas += len(slabs)
    out_bytes = math.prod(out_shape) * itemsize
    kernel = _make_dma_concat_kernel(plans, ndim, dim, len(xs))
    # TODO(synk): on v7x, split DMA issue/wait across the two TensorCores
    # (pl.core_map over pltpu.create_tensorcore_mesh) when descriptor count is
    # large; single-TC issue is sufficient for small input counts.
    return pl.pallas_call(
        kernel,
        out_shape=jax.ShapeDtypeStruct(out_shape, dtype),
        in_specs=[pl.BlockSpec(memory_space=pl.ANY) for _ in xs],
        out_specs=pl.BlockSpec(memory_space=pl.ANY),
        scratch_shapes=[pltpu.SemaphoreType.DMA((total_dmas,))],
        cost_estimate=pl.CostEstimate(
            flops=0, transcendentals=0, bytes_accessed=2 * out_bytes),
    )(*xs)


# ---------------------------------------------------------------------------
# Lane-dense VMEM path for last-dim concat with tiny contiguous runs
# ---------------------------------------------------------------------------

_VMEM_RUN_BYTES_MAX = 1024       # use VMEM path when every dst run is < 1 KiB
_VMEM_STEP_BYTES_MAX = 16 << 20  # stay well under v7x's scoped-VMEM default


def _make_vmem_concat_kernel(offsets, sizes, num_inputs, block_ndim):
    def kernel(*refs):
        in_refs = refs[:num_inputs]
        out_ref = refs[num_inputs]
        for r, off, sz in zip(in_refs, offsets, sizes):
            idx = [slice(None)] * block_ndim
            idx[-1] = pl.ds(off, sz)        # static offset/size
            out_ref[tuple(idx)] = r[...]
    return kernel


def _concat_vmem_lastdim(xs, offsets, sizes, out_shape, dtype):
    ndim = len(out_shape)
    itemsize = np.dtype(dtype).itemsize
    grid = tuple(int(d) for d in out_shape[:-2])
    n_grid = len(grid)
    sub = int(out_shape[-2])
    total = int(out_shape[-1])

    def make_spec(last_dim):
        block = (1,) * n_grid + (sub, last_dim)  # last two dims = full extents

        def index_map(*g):
            return tuple(g) + (0, 0)

        return pl.BlockSpec(block, index_map)

    in_specs = [make_spec(s) for s in sizes]
    out_spec = make_spec(total)
    kernel = _make_vmem_concat_kernel(offsets, sizes, len(xs), ndim)
    out_bytes = math.prod(out_shape) * itemsize

    compiler_params = None
    if n_grid:
        compiler_params = pltpu.CompilerParams(
            dimension_semantics=("parallel",) * n_grid)

    return pl.pallas_call(
        kernel,
        out_shape=jax.ShapeDtypeStruct(out_shape, dtype),
        grid=grid,
        in_specs=in_specs,
        out_specs=out_spec,
        compiler_params=compiler_params,
        cost_estimate=pl.CostEstimate(
            flops=0, transcendentals=0, bytes_accessed=2 * out_bytes),
    )(*xs)


# ---------------------------------------------------------------------------
# Public API
# ---------------------------------------------------------------------------

def pallas_concat(seq, dim=0):
    """torch.cat(seq, dim) equivalent implemented with Pallas TPU kernels."""
    seq = [jnp.asarray(x) for x in seq]
    if not seq:
        raise ValueError("pallas_concat needs at least one input")

    ndim = seq[0].ndim
    if ndim == 0:
        raise ValueError("zero-dimensional arrays cannot be concatenated")
    dim = dim % ndim
    base_shape = seq[0].shape

    for x in seq:
        if x.ndim != ndim:
            raise ValueError("all inputs must share rank")
        for a in range(ndim):
            if a != dim and x.shape[a] != base_shape[a]:
                raise ValueError("non-concat dims must match")

    # torch.cat promotes mixed dtypes; mirror that (no-op when dtypes match).
    dtype = jnp.result_type(*seq)
    seq = [x if x.dtype == dtype else x.astype(dtype) for x in seq]

    total = sum(int(x.shape[dim]) for x in seq)
    out_shape = tuple(
        total if a == dim else int(base_shape[a]) for a in range(ndim))

    # Empty output: covers zero total along the concat dim AND zero-sized
    # shared (non-concat) dims, so no zero-byte DMA slices are ever issued.
    if math.prod(out_shape) == 0:
        return jnp.zeros(out_shape, dtype)

    # Drop inputs that are empty along the concat dim (size-0 DMA slices are
    # not lowered).
    seq = [x for x in seq if int(x.shape[dim]) > 0]

    # Fast path: a single surviving input already *is* the result — skip the
    # full HBM read+write.
    if len(seq) == 1:
        return seq[0]

    sizes = [int(x.shape[dim]) for x in seq]
    offsets, acc = [], 0
    for s in sizes:
        offsets.append(acc)
        acc += s

    itemsize = np.dtype(dtype).itemsize

    # Last-dim concat with tiny contiguous destination runs: HBM->HBM strided
    # DMA is descriptor-bound there, so stage through VMEM with lane-dense,
    # contiguous output blocks instead (the biggest single lever per docs).
    if (
        dim == ndim - 1
        and ndim >= 2
        and max(sizes) * itemsize < _VMEM_RUN_BYTES_MAX
        and 4 * int(out_shape[-2]) * total * itemsize <= _VMEM_STEP_BYTES_MAX
    ):
        return _concat_vmem_lastdim(seq, offsets, sizes, out_shape, dtype)
    # TODO(synk): similar VMEM-staged path for middle-dim concat with a tiny
    # inner extent would also beat the strided-DMA path in that regime.

    # Note on alignment: concat offsets that are not multiples of the dtype
    # sublane tile (8/f32, 16/bf16, 32/int8) or of 128 lanes fragment the
    # HBM->HBM DMA into partial-tile descriptors; pad upstream channel counts
    # to the dtype tile when possible for full-bandwidth copies.
    return _concat_dma(seq, dim, offsets, sizes, out_shape, dtype)


class ConcatPallas:
    """JAX/Pallas equivalent of the PyTorch `Concat` module."""

    def __init__(self, dim=0):
        self.dim = dim

    def __call__(self, *seq):
        return pallas_concat(seq, dim=self.dim)


if __name__ == "__main__":
    key = jax.random.PRNGKey(0)
    k1, k2, k3 = jax.random.split(key, 3)

    # NCHW conv-style inputs, concat along the channel dim (dim=1) -> DMA path.
    N, H, W = 2, 16, 16
    x1 = jax.random.normal(k1, (N, 4, H, W), dtype=jnp.float32)
    x2 = jax.random.normal(k2, (N, 4, H, W), dtype=jnp.float32)
    x3 = jax.random.normal(k3, (N, 8, H, W), dtype=jnp.float32)

    concat = ConcatPallas(dim=1)
    out = jax.block_until_ready(concat(x1, x2, x3))
    ref = jnp.concatenate([x1, x2, x3], axis=1)
    assert out.shape == ref.shape and out.dtype == ref.dtype
    assert jnp.array_equal(out, ref), "mismatch vs jnp.concatenate (dim=1)"

    # dim=0 concat on 2D (contiguous destination slices) -> DMA path.
    a = jax.random.normal(k1, (8, 128), dtype=jnp.float32)
    b = jax.random.normal(k2, (16, 128), dtype=jnp.float32)
    out2 = jax.block_until_ready(ConcatPallas(dim=0)(a, b))
    assert jnp.array_equal(out2, jnp.concatenate([a, b], axis=0)), "dim=0 mismatch"

    # Last-dim concat with small contiguous runs -> lane-dense VMEM path.
    c = jax.random.normal(k3, (4, 8, 64), dtype=jnp.float32)
    d = jax.random.normal(k1, (4, 8, 32), dtype=jnp.float32)
    out3 = jax.block_until_ready(ConcatPallas(dim=-1)(c, d))
    assert jnp.array_equal(out3, jnp.concatenate([c, d], axis=-1)), "dim=-1 mismatch"

    # Single-input fast path.
    out4 = jax.block_until_ready(ConcatPallas(dim=1)(x1))
    assert jnp.array_equal(out4, x1), "single-input fast path mismatch"

    print("KERNEL_OK")
</pallas_src>

<mosaic_0001>
module attributes {stable_mosaic.version = 11 : i64} {
  func.func @kernel(%arg0: memref<2x4x16x16xf32, #tpu.memory_space<any>>, %arg1: memref<2x4x16x16xf32, #tpu.memory_space<any>>, %arg2: memref<2x8x16x16xf32, #tpu.memory_space<any>>, %arg3: memref<2x16x16x16xf32, #tpu.memory_space<any>>, %arg4: memref<3x!tpu.dma_semaphore, #tpu.memory_space<semaphore_mem>>) attributes {dimension_semantics = [], scalar_prefetch = 0 : i64, scratch_operands = 1 : i64, tpu.core_type = #tpu.core_type<tc>} {
    %c0_i32 = arith.constant 0 : i32
    %c0_i32_0 = arith.constant 0 : i32
    %c0_i32_1 = arith.constant 0 : i32
    %c0_i32_2 = arith.constant 0 : i32
    %c0_i32_3 = arith.constant 0 : i32
    %0 = tpu.memref_slice %arg0[%c0_i32_0, %c0_i32_1, %c0_i32_2, %c0_i32_3] : memref<2x4x16x16xf32, #tpu.memory_space<any>> -> memref<2x4x16x16xf32, #tpu.memory_space<any>>
    %c0_i32_4 = arith.constant 0 : i32
    %c0_i32_5 = arith.constant 0 : i32
    %c0_i32_6 = arith.constant 0 : i32
    %c0_i32_7 = arith.constant 0 : i32
    %1 = tpu.memref_slice %arg3[%c0_i32_4, %c0_i32_5, %c0_i32_6, %c0_i32_7] : memref<2x16x16x16xf32, #tpu.memory_space<any>> -> memref<2x4x16x16xf32, #tpu.memory_space<any>>
    %2 = tpu.memref_slice %arg4[%c0_i32] : memref<3x!tpu.dma_semaphore, #tpu.memory_space<semaphore_mem>> -> memref<1x!tpu.dma_semaphore, #tpu.memory_space<semaphore_mem>>
    %3 = tpu.memref_squeeze %2 : memref<1x!tpu.dma_semaphore, #tpu.memory_space<semaphore_mem>> -> memref<!tpu.dma_semaphore, #tpu.memory_space<semaphore_mem>>
    tpu.enqueue_dma source(%0 : memref<2x4x16x16xf32, #tpu.memory_space<any>>) target(%1 : memref<2x4x16x16xf32, #tpu.memory_space<any>>) target_semaphore(%3 : memref<!tpu.dma_semaphore, #tpu.memory_space<semaphore_mem>>)
    %c1_i32 = arith.constant 1 : i32
    %c0_i32_8 = arith.constant 0 : i32
    %c0_i32_9 = arith.constant 0 : i32
    %c0_i32_10 = arith.constant 0 : i32
    %c0_i32_11 = arith.constant 0 : i32
    %4 = tpu.memref_slice %arg1[%c0_i32_8, %c0_i32_9, %c0_i32_10, %c0_i32_11] : memref<2x4x16x16xf32, #tpu.memory_space<any>> -> memref<2x4x16x16xf32, #tpu.memory_space<any>>
    %c0_i32_12 = arith.constant 0 : i32
    %c4_i32 = arith.constant 4 : i32
    %c0_i32_13 = arith.constant 0 : i32
    %c0_i32_14 = arith.constant 0 : i32
    %5 = tpu.memref_slice %arg3[%c0_i32_12, %c4_i32, %c0_i32_13, %c0_i32_14] : memref<2x16x16x16xf32, #tpu.memory_space<any>> -> memref<2x4x16x16xf32, #tpu.memory_space<any>>
    %6 = tpu.memref_slice %arg4[%c1_i32] : memref<3x!tpu.dma_semaphore, #tpu.memory_space<semaphore_mem>> -> memref<1x!tpu.dma_semaphore, #tpu.memory_space<semaphore_mem>>
    %7 = tpu.memref_squeeze %6 : memref<1x!tpu.dma_semaphore, #tpu.memory_space<semaphore_mem>> -> memref<!tpu.dma_semaphore, #tpu.memory_space<semaphore_mem>>
    tpu.enqueue_dma source(%4 : memref<2x4x16x16xf32, #tpu.memory_space<any>>) target(%5 : memref<2x4x16x16xf32, #tpu.memory_space<any>>) target_semaphore(%7 : memref<!tpu.dma_semaphore, #tpu.memory_space<semaphore_mem>>)
    %c2_i32 = arith.constant 2 : i32
    %c0_i32_15 = arith.constant 0 : i32
    %c0_i32_16 = arith.constant 0 : i32
    %c0_i32_17 = arith.constant 0 : i32
    %c0_i32_18 = arith.constant 0 : i32
    %8 = tpu.memref_slice %arg2[%c0_i32_15, %c0_i32_16, %c0_i32_17, %c0_i32_18] : memref<2x8x16x16xf32, #tpu.memory_space<any>> -> memref<2x8x16x16xf32, #tpu.memory_space<any>>
    %c0_i32_19 = arith.constant 0 : i32
    %c8_i32 = arith.constant 8 : i32
    %c0_i32_20 = arith.constant 0 : i32
    %c0_i32_21 = arith.constant 0 : i32
    %9 = tpu.memref_slice %arg3[%c0_i32_19, %c8_i32, %c0_i32_20, %c0_i32_21] : memref<2x16x16x16xf32, #tpu.memory_space<any>> -> memref<2x8x16x16xf32, #tpu.memory_space<any>>
    %10 = tpu.memref_slice %arg4[%c2_i32] : memref<3x!tpu.dma_semaphore, #tpu.memory_space<semaphore_mem>> -> memref<1x!tpu.dma_semaphore, #tpu.memory_space<semaphore_mem>>
    %11 = tpu.memref_squeeze %10 : memref<1x!tpu.dma_semaphore, #tpu.memory_space<semaphore_mem>> -> memref<!tpu.dma_semaphore, #tpu.memory_space<semaphore_mem>>
    tpu.enqueue_dma source(%8 : memref<2x8x16x16xf32, #tpu.memory_space<any>>) target(%9 : memref<2x8x16x16xf32, #tpu.memory_space<any>>) target_semaphore(%11 : memref<!tpu.dma_semaphore, #tpu.memory_space<semaphore_mem>>)
    %c0_i32_22 = arith.constant 0 : i32
    %c0_i32_23 = arith.constant 0 : i32
    %c0_i32_24 = arith.constant 0 : i32
    %c0_i32_25 = arith.constant 0 : i32
    %c0_i32_26 = arith.constant 0 : i32
    %12 = tpu.memref_slice %arg0[%c0_i32_23, %c0_i32_24, %c0_i32_25, %c0_i32_26] : memref<2x4x16x16xf32, #tpu.memory_space<any>> -> memref<2x4x16x16xf32, #tpu.memory_space<any>>
    %c0_i32_27 = arith.constant 0 : i32
    %c0_i32_28 = arith.constant 0 : i32
    %c0_i32_29 = arith.constant 0 : i32
    %c0_i32_30 = arith.constant 0 : i32
    %13 = tpu.memref_slice %arg3[%c0_i32_27, %c0_i32_28, %c0_i32_29, %c0_i32_30] : memref<2x16x16x16xf32, #tpu.memory_space<any>> -> memref<2x4x16x16xf32, #tpu.memory_space<any>>
    %14 = tpu.memref_slice %arg4[%c0_i32_22] : memref<3x!tpu.dma_semaphore, #tpu.memory_space<semaphore_mem>> -> memref<1x!tpu.dma_semaphore, #tpu.memory_space<semaphore_mem>>
    %15 = tpu.memref_squeeze %14 : memref<1x!tpu.dma_semaphore, #tpu.memory_space<semaphore_mem>> -> memref<!tpu.dma_semaphore, #tpu.memory_space<semaphore_mem>>
    tpu.wait_dma2 semaphore(%15 : memref<!tpu.dma_semaphore, #tpu.memory_space<semaphore_mem>>) src(%12 : memref<2x4x16x16xf32, #tpu.memory_space<any>>) dst(%13 : memref<2x4x16x16xf32, #tpu.memory_space<any>>)
    %c1_i32_31 = arith.constant 1 : i32
    %c0_i32_32 = arith.constant 0 : i32
    %c0_i32_33 = arith.constant 0 : i32
    %c0_i32_34 = arith.constant 0 : i32
    %c0_i32_35 = arith.constant 0 : i32
    %16 = tpu.memref_slice %arg1[%c0_i32_32, %c0_i32_33, %c0_i32_34, %c0_i32_35] : memref<2x4x16x16xf32, #tpu.memory_space<any>> -> memref<2x4x16x16xf32, #tpu.memory_space<any>>
    %c0_i32_36 = arith.constant 0 : i32
    %c4_i32_37 = arith.constant 4 : i32
    %c0_i32_38 = arith.constant 0 : i32
    %c0_i32_39 = arith.constant 0 : i32
    %17 = tpu.memref_slice %arg3[%c0_i32_36, %c4_i32_37, %c0_i32_38, %c0_i32_39] : memref<2x16x16x16xf32, #tpu.memory_space<any>> -> memref<2x4x16x16xf32, #tpu.memory_space<any>>
    %18 = tpu.memref_slice %arg4[%c1_i32_31] : memref<3x!tpu.dma_semaphore, #tpu.memory_space<semaphore_mem>> -> memref<1x!tpu.dma_semaphore, #tpu.memory_space<semaphore_mem>>
    %19 = tpu.memref_squeeze %18 : memref<1x!tpu.dma_semaphore, #tpu.memory_space<semaphore_mem>> -> memref<!tpu.dma_semaphore, #tpu.memory_space<semaphore_mem>>
    tpu.wait_dma2 semaphore(%19 : memref<!tpu.dma_semaphore, #tpu.memory_space<semaphore_mem>>) src(%16 : memref<2x4x16x16xf32, #tpu.memory_space<any>>) dst(%17 : memref<2x4x16x16xf32, #tpu.memory_space<any>>)
    %c2_i32_40 = arith.constant 2 : i32
    %c0_i32_41 = arith.constant 0 : i32
    %c0_i32_42 = arith.constant 0 : i32
    %c0_i32_43 = arith.constant 0 : i32
    %c0_i32_44 = arith.constant 0 : i32
    %20 = tpu.memref_slice %arg2[%c0_i32_41, %c0_i32_42, %c0_i32_43, %c0_i32_44] : memref<2x8x16x16xf32, #tpu.memory_space<any>> -> memref<2x8x16x16xf32, #tpu.memory_space<any>>
    %c0_i32_45 = arith.constant 0 : i32
    %c8_i32_46 = arith.constant 8 : i32
    %c0_i32_47 = arith.constant 0 : i32
    %c0_i32_48 = arith.constant 0 : i32
    %21 = tpu.memref_slice %arg3[%c0_i32_45, %c8_i32_46, %c0_i32_47, %c0_i32_48] : memref<2x16x16x16xf32, #tpu.memory_space<any>> -> memref<2x8x16x16xf32, #tpu.memory_space<any>>
    %22 = tpu.memref_slice %arg4[%c2_i32_40] : memref<3x!tpu.dma_semaphore, #tpu.memory_space<semaphore_mem>> -> memref<1x!tpu.dma_semaphore, #tpu.memory_space<semaphore_mem>>
    %23 = tpu.memref_squeeze %22 : memref<1x!tpu.dma_semaphore, #tpu.memory_space<semaphore_mem>> -> memref<!tpu.dma_semaphore, #tpu.memory_space<semaphore_mem>>
    tpu.wait_dma2 semaphore(%23 : memref<!tpu.dma_semaphore, #tpu.memory_space<semaphore_mem>>) src(%20 : memref<2x8x16x16xf32, #tpu.memory_space<any>>) dst(%21 : memref<2x8x16x16xf32, #tpu.memory_space<any>>)
    return
  }
}

</mosaic_0001>

<bundles_post_ra>
// kernel: tpu_custom_call.1
= control target key start
LH: loop header
LB: loop body
LE: loop exit
PB: predicated region body
PF: predicated region fallthrough
CT: control target
= control target key end

     0   :  { %s122_s12 = smov 1024   ;;  %s123_s13 = smov 4096   ;;  %s172_s0 = inlined_call_operand.hbm [shape: f32[2,4,16,16], index: 0, kind: input, shape index: {}]   ;;  %s173_s1 = inlined_call_operand.hbm [shape: f32[2,4,16,16], index: 1, kind: input, shape index: {}]   ;;  %s174_s2 = inlined_call_operand.hbm [shape: f32[2,8,16,16], index: 2, kind: input, shape index: {}]   ;;  %s175_s3 = inlined_call_operand.hbm [shape: f32[2,16,16,16], index: 3, kind: output, shape index: {}]  }
   0x1   :  { %20 = sst [smem:[#allocation4]] %s122_s12  ;;  %s124_s14 = smov 64  }
   0x2   :  { %22 = sst [smem:[#allocation4 + $0x1]] %s123_s13  ;;  %s27_s17 = scalar_lea.hbm %s175_s3, 1024 }
   0x3   :  { %24 = sst [smem:[#allocation4 + $0x2]] %s124_s14  ;;  %s125_s18 = smov [#allocation2]  }
   0x4   :  { %s126_s19 = smov [#allocation3]   ;;  %s127_s20 = smov 0  }
   0x5   :  { %26 = dma.general %s172_s0, 2048, %s175_s3, %s125_s18, %s126_s19, [#allocation4], %s127_s20, 0  }
   0x6   :  { %41 = sst [smem:[#allocation6]] %s122_s12  ;;  %s128_s25 = smov [#allocation2 + $0x1]  }
   0x7   :  { %43 = sst [smem:[#allocation6 + $0x1]] %s123_s13  ;;  %s129_s26 = smov [#allocation5]  }
   0x8   :  { %45 = sst [smem:[#allocation6 + $0x2]] %s124_s14  ;;  %s130_s29 = smov 2048  }
   0x9   :  { %47 = dma.general %s173_s1, 2048, %s27_s17, %s128_s25, %s129_s26, [#allocation6], %s127_s20, 0  }
   0xa   :  { %62 = sst [smem:[#allocation8]] %s130_s29  ;;  %s48_s5 = scalar_lea.hbm %s175_s3, 2048 }
   0xb   :  { %64 = sst [smem:[#allocation8 + $0x1]] %s123_s13  ;;  %s131_s6 = smov 128  }
   0xc   :  { %66 = sst [smem:[#allocation8 + $0x2]] %s131_s6  ;;  %s132_s7 = smov [#allocation2 + $0x2]  }
   0xd   :  { %s133_s0 = smov [#allocation7]  }
   0xe   :  { %68 = dma.general %s174_s2, 4096, %s48_s5, %s132_s7, %s133_s0, [#allocation8], %s127_s20, 0  }
   0xf   :  { %116 = dma.done.wait [#allocation2], 2048 }
  0x10   :  { %117 = vsyncadd [#allocation2], 4294965248 }
  0x11   :  { %118 = dma.done.wait [#allocation2 + $0x1], 2048 }
  0x12   :  { %119 = vsyncadd [#allocation2 + $0x1], 4294965248 }
  0x13   :  { %120 = dma.done.wait [#allocation2 + $0x2], 4096 }
  0x14   :  { %121 = vsyncadd [#allocation2 + $0x2], 4294963200 }
  0x15   :  { %81 = vsyncmov [#allocation2] }
  0x18   :  { %s82_s1 = vpop.sfrf %81 }
  0x19   :  { %p101_p0 = scmp.ne.s32.totalorder %s82_s1, 0 }
  0x1b   :  { %86 = shalt.err (%p101_p0)  }
  0x1c   :  { %88 = vsyncmov [#allocation2 + $0x1] }
  0x1f   :  { %s89_s3 = vpop.sfrf %88 }
  0x20   :  { %p102_p1 = scmp.ne.s32.totalorder %s89_s3, 0 }
  0x22   :  { %93 = shalt.err (%p102_p1)  }
  0x23   :  { %95 = vsyncmov [#allocation2 + $0x2] }
  0x26   :  { %s96_s10 = vpop.sfrf %95 }
  0x27   :  { %p103_p2 = scmp.ne.s32.totalorder %s96_s10, 0 }
  0x29   :  { %100 = shalt.err (%p103_p2)  }

</bundles_post_ra>
